<compile_context>
chip_gen: v7x
topology: tpu7x:2x2x1
jax: 0.10.0
libtpu: 0.0.40
codegen_flags: <defaults>
</compile_context>

<pallas_src>
import functools
import math

import jax
import jax.numpy as jnp
from jax.experimental import pallas as pl
from jax.experimental.pallas import tpu as pltpu

_LANE = 128
_SUBLANE = 8
_BLOCK_BYTE_BUDGET = 2 * 1024 * 1024   # combined logits+labels bytes per block


def _loss_kernel(labels_ref, logits_ref, out_ref, acc_ref, *,
                 hard, num_blocks, steps, valid_rows, inv_batch):
    """One grid step. Grid = (n_par, steps): axis 0 "parallel", axis 1 reduction.

    labels_ref: hard=True  -> int32 [TB, L]: per lane(-group), the lane index
                              that takes log(p) (L==1 un-folded, L==W folded).
                hard=False -> float soft labels [TB, W].
    logits_ref: [TB, W] probabilities (f32 or bf16, upcast in-register).
    out_ref:    [8, 128] f32 block holding this partition's partial (broadcast).
    acc_ref:    [1, W] f32 running partial; lane-reduced only in the epilogue.
    """
    p_idx = pl.program_id(0)
    i = pl.program_id(1)
    raw = p_idx * steps + i                    # global row-block index

    @pl.when(i == 0)
    def _init():
        acc_ref[...] = jnp.zeros_like(acc_ref)

    tb, w = logits_ref.shape

    @pl.when(raw < num_blocks)                 # skip duplicate (clamped) blocks
    def _compute():
        logits = logits_ref[...].astype(jnp.float32)
        p = jnp.clip(logits, 1e-8, 1.0)        # clamp(logits, 1e-8, 1)
        q = jnp.maximum(1.0 - p, 1e-8)         # upper clamp is a no-op (p>=1e-8)

        if hard:
            lane = jax.lax.broadcasted_iota(jnp.int32, (tb, w), 1)
            # Select BEFORE the log: one EUP transcendental per element.
            terms = jnp.log(jnp.where(lane == labels_ref[...], p, q))
        else:
            labels = labels_ref[...].astype(jnp.float32)
            log_p = jnp.log(p)
            log_q = jnp.log(q)
            terms = labels * (log_p - log_q) + log_q

        def _accum(t):
            # Single-vreg accumulator: sublane reduce per step (XLU), no
            # full-tile accumulator load/store traffic.
            acc_ref[...] += jnp.sum(t, axis=0, keepdims=True)

        if valid_rows % tb != 0:
            # Only the last real block can contain out-of-range rows.
            @pl.when(raw == num_blocks - 1)
            def _tail():
                rows = raw * tb + jax.lax.broadcasted_iota(jnp.int32, (tb, w), 0)
                _accum(jnp.where(rows < valid_rows, terms, 0.0))

            @pl.when(raw < num_blocks - 1)
            def _full():
                _accum(terms)
        else:
            _accum(terms)

    @pl.when(i == steps - 1)
    def _fini():
        partial = -jnp.sum(acc_ref[...]) * inv_batch
        out_ref[...] = jnp.zeros_like(out_ref) + partial


def my_loss_pallas(logits, labels, *, block_rows=None):
    """JAX/Pallas equivalent of the PyTorch `my_loss.forward`.

    logits: [B, C] float32 or bfloat16 probabilities.
    labels: [B] integer class ids, or [B, C] float32 soft/one-hot labels.
    Returns a scalar float32 loss.
    """
    b, c = logits.shape
    if logits.dtype not in (jnp.float32, jnp.bfloat16):
        logits = logits.astype(jnp.float32)

    if jnp.issubdtype(labels.dtype, jnp.floating):
        if labels.dtype != jnp.float32:
            raise TypeError(
                f"float labels must be float32 (soft labels); got {labels.dtype}")
        hard = False
        assert labels.shape == (b, c), "float32 labels must have shape [B, C]"
    else:
        hard = True
        assert labels.shape == (b,), "integer labels must have shape [B]"

    # ---- Lane folding: fold k batch rows into the lane dim so that small C
    #      (e.g. C=8) does not waste 120/128 lanes of every vreg. ----
    k = 1
    if c < _LANE:
        k0 = _LANE // math.gcd(c, _LANE)       # smallest k with k*C % 128 == 0
        if b % k0 == 0:
            k = k0
    rows = b // k                              # folded batch rows
    w = k * c                                  # folded lane width

    logits_in = logits.reshape(rows, w) if k > 1 else logits

    if hard:
        labels_i32 = labels.astype(jnp.int32)
        if k > 1:
            # Per-lane "hot lane index": group j of a folded row owns lanes
            # [j*C, (j+1)*C); its hot lane is j*C + label. Out-of-range labels
            # land outside the group's lane range -> never match (zero row).
            offs = (jnp.arange(k, dtype=jnp.int32) * c)[None, :]
            tgt = labels_i32.reshape(rows, k) + offs            # [rows, k]
            labels_in = jnp.repeat(tgt, c, axis=1)              # [rows, w] int32
            lab_lane = w
        else:
            labels_in = labels_i32.reshape(rows, 1)             # [B, 1] int32
            lab_lane = 1
    else:
        labels_in = labels.reshape(rows, w) if k > 1 else labels
        lab_lane = w

    # ---- Batch tile sized by a VMEM byte budget (not a fixed row count). ----
    bytes_per_row = (w * logits_in.dtype.itemsize
                     + lab_lane * labels_in.dtype.itemsize)
    if block_rows is None:
        tb = _BLOCK_BYTE_BUDGET // max(bytes_per_row, 1)
        tb = max(_SUBLANE, (tb // _SUBLANE) * _SUBLANE)
    else:
        tb = max(1, int(block_rows))
    tb = min(tb, rows)
    if tb < rows:
        tb = max(_SUBLANE, (tb // _SUBLANE) * _SUBLANE)

    num_blocks = pl.cdiv(rows, tb)
    n_par = 2 if num_blocks >= 2 else 1        # engage v7x's second TensorCore
    steps = pl.cdiv(num_blocks, n_par)
    inv_batch = 1.0 / float(b)

    def row_block(p, i):
        # Uneven splits: clamp trailing duplicate blocks onto the last real
        # block; the kernel skips their contribution via `raw < num_blocks`.
        return (jnp.minimum(p * steps + i, num_blocks - 1), 0)

    kernel = functools.partial(_loss_kernel, hard=hard, num_blocks=num_blocks,
                               steps=steps, valid_rows=rows, inv_batch=inv_batch)

    block_bytes = tb * bytes_per_row
    vmem_limit = int(min(max(3 * block_bytes + (4 << 20), 16 << 20), 30 << 20))

    out = pl.pallas_call(
        kernel,
        out_shape=jax.ShapeDtypeStruct((n_par * _SUBLANE, _LANE), jnp.float32),
        grid=(n_par, steps),
        in_specs=[pl.BlockSpec((tb, lab_lane), row_block),
                  pl.BlockSpec((tb, w), row_block)],
        out_specs=pl.BlockSpec((_SUBLANE, _LANE), lambda p, i: (p, 0)),
        scratch_shapes=[pltpu.VMEM((1, w), jnp.float32)],   # single-vreg acc
        compiler_params=pltpu.CompilerParams(
            dimension_semantics=("parallel", "arbitrary"),
            vmem_limit_bytes=vmem_limit),
    )(labels_in, logits_in)

    # One partial per parallel partition (broadcast over its (8,128) block).
    return jnp.sum(out[::_SUBLANE, 0])


if __name__ == "__main__":
    key = jax.random.PRNGKey(0)
    k1, k2, k3, k4, k5 = jax.random.split(key, 5)

    # Pure-JAX reference mirroring the PyTorch loop exactly.
    def ref_loss(lg, lab_float):
        p = jnp.clip(lg, 1e-8, 1.0)
        q = jnp.clip(1.0 - p, 1e-8, 1.0)
        loss = 0.0
        for i in range(lg.shape[-1]):
            loss += -jnp.mean(lab_float[:, i] * jnp.log(p[:, i])
                              + (1.0 - lab_float[:, i]) * jnp.log(q[:, i]))
        return loss

    # 1) hard integer labels, lane-folded path (B=64, C=8 -> fold factor 16)
    B, C = 64, 8
    logits = jax.random.uniform(k1, (B, C), jnp.float32, 0.01, 0.99)
    labels = jax.random.randint(k2, (B,), 0, C, dtype=jnp.int32)
    got = jax.block_until_ready(my_loss_pallas(logits, labels))
    want = ref_loss(logits, jax.nn.one_hot(labels, C, dtype=jnp.float32))
    assert jnp.allclose(got, want, rtol=1e-5, atol=1e-5), (got, want)

    # 2) soft float32 labels (folded path: pure reshape, same kernel skeleton)
    soft = jax.random.uniform(k3, (B, C), jnp.float32)
    got = jax.block_until_ready(my_loss_pallas(logits, soft))
    want = ref_loss(logits, soft)
    assert jnp.allclose(got, want, rtol=1e-5, atol=1e-5), (got, want)

    # 3) bf16 logits (upcast in-register inside the kernel)
    logits_bf16 = logits.astype(jnp.bfloat16)
    got = jax.block_until_ready(my_loss_pallas(logits_bf16, labels))
    want = ref_loss(logits_bf16.astype(jnp.float32),
                    jax.nn.one_hot(labels, C, dtype=jnp.float32))
    assert jnp.allclose(got, want, rtol=1e-5, atol=1e-5), (got, want)

    # 4) un-folded path + uneven 2-partition split + remainder-row masking
    B2 = 20
    logits2 = jax.random.uniform(k4, (B2, C), jnp.float32, 0.01, 0.99)
    labels2 = jax.random.randint(k5, (B2,), 0, C, dtype=jnp.int32)
    got = jax.block_until_ready(my_loss_pallas(logits2, labels2, block_rows=8))
    want = ref_loss(logits2, jax.nn.one_hot(labels2, C, dtype=jnp.float32))
    assert jnp.allclose(got, want, rtol=1e-5, atol=1e-5), (got, want)

    print("KERNEL_OK")
</pallas_src>

<mosaic_0001>
module attributes {stable_mosaic.version = 11 : i64} {
  func.func @_loss_kernel(%arg0: i32, %arg1: i32, %arg2: memref<4x128xi32, #tpu.memory_space<vmem>>, %arg3: memref<4x128xf32, #tpu.memory_space<vmem>>, %arg4: memref<8x128xf32, #tpu.memory_space<vmem>>, %arg5: memref<1x128xf32, #tpu.memory_space<vmem>>) attributes {dimension_semantics = [#tpu.dimension_semantics<parallel>, #tpu.dimension_semantics<arbitrary>], iteration_bounds = array<i64: 1, 1>, scalar_prefetch = 0 : i64, scratch_operands = 1 : i64, tpu.core_type = #tpu.core_type<tc>, window_params = [{transform_indices = @transform_0, window_bounds = array<i64: 4, 128>}, {transform_indices = @transform_1, window_bounds = array<i64: 4, 128>}, {transform_indices = @transform_2, window_bounds = array<i64: 8, 128>}]} {
    %c1_i32 = arith.constant 1 : i32
    %0 = arith.muli %arg0, %c1_i32 : i32
    %1 = arith.addi %0, %arg1 : i32
    %c0_i32 = arith.constant 0 : i32
    %2 = arith.cmpi eq, %arg1, %c0_i32 : i32
    %3 = arith.extui %2 : i1 to i32
    %c0_i32_0 = arith.constant 0 : i32
    %4 = arith.cmpi ne, %3, %c0_i32_0 : i32
    scf.if %4 {
      %cst = arith.constant 0.000000e+00 : f32
      %11 = vector.broadcast %cst : f32 to vector<1x128xf32>
      %c0 = arith.constant 0 : index
      %c0_5 = arith.constant 0 : index
      %12 = vector.load %arg5[%c0, %c0_5] : memref<1x128xf32, #tpu.memory_space<vmem>>, vector<1x128xf32>
      tpu.vector_store %arg5[%c0, %c0_5], %11 {strides = array<i32>} : memref<1x128xf32, #tpu.memory_space<vmem>>, vector<1x128xf32>,
    } else {
    }
    %c1_i32_1 = arith.constant 1 : i32
    %5 = arith.cmpi slt, %1, %c1_i32_1 : i32
    %6 = arith.extui %5 : i1 to i32
    %c0_i32_2 = arith.constant 0 : i32
    %7 = arith.cmpi ne, %6, %c0_i32_2 : i32
    scf.if %7 {
      %c0 = arith.constant 0 : index
      %c0_5 = arith.constant 0 : index
      %11 = vector.load %arg3[%c0, %c0_5] : memref<4x128xf32, #tpu.memory_space<vmem>>, vector<4x128xf32>
      %cst = arith.constant 9.99999993E-9 : f32
      %cst_6 = arith.constant 1.000000e+00 : f32
      %12 = vector.broadcast %cst : f32 to vector<4x128xf32>
      %13 = arith.maximumf %12, %11 : vector<4x128xf32>
      %14 = vector.broadcast %cst_6 : f32 to vector<4x128xf32>
      %15 = arith.minimumf %14, %13 : vector<4x128xf32>
      %cst_7 = arith.constant 1.000000e+00 : f32
      %16 = vector.broadcast %cst_7 : f32 to vector<4x128xf32>
      %17 = arith.subf %16, %15 : vector<4x128xf32>
      %cst_8 = arith.constant 9.99999993E-9 : f32
      %18 = vector.broadcast %cst_8 : f32 to vector<4x128xf32>
      %19 = arith.maximumf %17, %18 : vector<4x128xf32>
      %20 = tpu.iota {dimensions = array<i32: 1>} : vector<4x128xi32>
      %c0_9 = arith.constant 0 : index
      %c0_10 = arith.constant 0 : index
      %21 = vector.load %arg2[%c0_9, %c0_10] : memref<4x128xi32, #tpu.memory_space<vmem>>, vector<4x128xi32>
      %22 = arith.cmpi eq, %20, %21 : vector<4x128xi32>
      %23 = arith.select %22, %15, %19 : vector<4x128xi1>, vector<4x128xf32>
      %24 = math.log %23 : vector<4x128xf32>
      %c0_11 = arith.constant 0 : index
      %c0_12 = arith.constant 0 : index
      %25 = vector.load %arg5[%c0_11, %c0_12] : memref<1x128xf32, #tpu.memory_space<vmem>>, vector<1x128xf32>
      %cst_13 = arith.constant dense<0.000000e+00> : vector<128xf32>
      %26 = vector.multi_reduction <add>, %24, %cst_13 [0] : vector<4x128xf32> to vector<128xf32>
      %27 = vector.shape_cast %26 : vector<128xf32> to vector<1x128xf32>
      %28 = arith.addf %25, %27 : vector<1x128xf32>
      %c0_14 = arith.constant 0 : index
      %c0_15 = arith.constant 0 : index
      %29 = vector.load %arg5[%c0_14, %c0_15] : memref<1x128xf32, #tpu.memory_space<vmem>>, vector<1x128xf32>
      tpu.vector_store %arg5[%c0_14, %c0_15], %28 {strides = array<i32>} : memref<1x128xf32, #tpu.memory_space<vmem>>, vector<1x128xf32>,
    } else {
    }
    %c0_i32_3 = arith.constant 0 : i32
    %8 = arith.cmpi eq, %arg1, %c0_i32_3 : i32
    %9 = arith.extui %8 : i1 to i32
    %c0_i32_4 = arith.constant 0 : i32
    %10 = arith.cmpi ne, %9, %c0_i32_4 : i32
    scf.if %10 {
      %c0 = arith.constant 0 : index
      %c0_5 = arith.constant 0 : index
      %11 = vector.load %arg5[%c0, %c0_5] : memref<1x128xf32, #tpu.memory_space<vmem>>, vector<1x128xf32>
      %12 = vector.shape_cast %11 : vector<1x128xf32> to vector<1x1x128xf32>
      %cst = arith.constant dense<0.000000e+00> : vector<1xf32>
      %13 = vector.multi_reduction <add>, %12, %cst [1, 2] : vector<1x1x128xf32> to vector<1xf32>
      %14 = vector.shape_cast %13 : vector<1xf32> to vector<1x1x1xf32>
      %15 = vector.extract %14[0, 0, 0] : f32 from vector<1x1x1xf32>
      %cst_6 = arith.constant 0.000000e+00 : f32
      %16 = arith.subf %cst_6, %15 : f32
      %cst_7 = arith.constant 1.562500e-02 : f32
      %17 = arith.mulf %16, %cst_7 : f32
      %cst_8 = arith.constant 0.000000e+00 : f32
      %18 = vector.broadcast %cst_8 : f32 to vector<8x128xf32>
      %19 = vector.broadcast %17 : f32 to vector<8x128xf32>
      %20 = arith.addf %18, %19 : vector<8x128xf32>
      %c0_9 = arith.constant 0 : index
      %c0_10 = arith.constant 0 : index
      %21 = vector.load %arg4[%c0_9, %c0_10] : memref<8x128xf32, #tpu.memory_space<vmem>>, vector<8x128xf32>
      tpu.vector_store %arg4[%c0_9, %c0_10], %20 {strides = array<i32>} : memref<8x128xf32, #tpu.memory_space<vmem>>, vector<8x128xf32>,
    } else {
    }
    return
  }
  func.func @transform_0(%arg0: i32, %arg1: i32) -> (i32, i32) {
    %c1_i32 = arith.constant 1 : i32
    %0 = arith.muli %arg0, %c1_i32 : i32
    %1 = arith.addi %0, %arg1 : i32
    %c0_i32 = arith.constant 0 : i32
    %2 = arith.minsi %1, %c0_i32 : i32
    %c0_i32_0 = arith.constant 0 : i32
    %c0_i32_1 = arith.constant 0 : i32
    return %2, %c0_i32_0 : i32, i32
  }
  func.func @transform_1(%arg0: i32, %arg1: i32) -> (i32, i32) {
    %c1_i32 = arith.constant 1 : i32
    %0 = arith.muli %arg0, %c1_i32 : i32
    %1 = arith.addi %0, %arg1 : i32
    %c0_i32 = arith.constant 0 : i32
    %2 = arith.minsi %1, %c0_i32 : i32
    %c0_i32_0 = arith.constant 0 : i32
    %c0_i32_1 = arith.constant 0 : i32
    return %2, %c0_i32_0 : i32, i32
  }
  func.func @transform_2(%arg0: i32, %arg1: i32) -> (i32, i32) {
    %c0_i32 = arith.constant 0 : i32
    %c0_i32_0 = arith.constant 0 : i32
    return %arg0, %c0_i32 : i32, i32
  }
}

</mosaic_0001>

<bundles_post_ra>
// kernel: tpu_custom_call.1
= control target key start
LH: loop header
LB: loop body
LE: loop exit
PB: predicated region body
PF: predicated region fallthrough
CT: control target
= control target key end

     0   :  { %7 = vsyncpa [#allocation4], 0  ;;  %s260_s0 = inlined_call_operand.hbm [shape: s32[4,128], index: 0, kind: input, shape index: {}]   ;;  %s261_s1 = inlined_call_operand.hbm [shape: f32[4,128], index: 1, kind: input, shape index: {}]   ;;  %s262_s2 = inlined_call_operand.hbm [shape: f32[8,128], index: 2, kind: output, shape index: {}]  }
   0x1   :  { %8 = vsyncpa [#allocation7], 0 }
   0x2   :  { %9 = vsyncpa [#allocation5], 0  ;;  %s205_s9 = smov [#allocation3]   ;;  %s206_s11 = smov [#allocation6]  }
   0x3   :  { %s21_s10 = sshll.u32 %s205_s9, 4  ;;  %s36_s12 = sshll.u32 %s206_s11, 4  ;;  %s22_s10 = int_to_ptr.vmem [resolvable:$true] %s21_s10  ;;  %s37_s12 = int_to_ptr.vmem [resolvable:$true] %s36_s12 }
   0x4   :  { %s133_s15 = scalar_lea.hbm %s260_s0, 64 }
   0x5   :  { %p134_p0 = scmp.ne.s32.totalorder %s260_s0, %s133_s15  ;;  %p137_p1 = scmp.lt.u32.totalorder %s133_s15, %s260_s0 }
   0x7   :  { %p139_p2 = pnand %p137_p1, %p134_p0 }
   0x9   :  { %142 = shalt.err (!%p139_p2)
}
   0xa   :  { %s143_s20 = scalar_lea.vmem %s22_s10, 64  ;;  %p148_p4 = scmp.lt.s32.totalorder %s22_s10, %s22_s10 }
   0xb   :  { %p144_p3 = scmp.ne.s32.totalorder %s22_s10, %s143_s20  ;;  %p149_p5 = scmp.lt.s32.totalorder %s143_s20, %s143_s20 }
   0xd   :  { %p150_p6 = por %p149_p5, %p148_p4 }
   0xf   :  { %p151_p7 = pnand %p150_p6, %p144_p3 }
  0x11   :  { %154 = shalt.err (!%p151_p7)
}
  0x12   :  { %24 = dma.hbm_to_vmem [thread:$0]  %s260_s0, 64, %s22_s10, [#allocation4]  }
  0x13   :  { %s155_s25 = scalar_lea.hbm %s261_s1, 64 }
  0x14   :  { %p156_p8 = scmp.ne.s32.totalorder %s261_s1, %s155_s25  ;;  %p159_p9 = scmp.lt.u32.totalorder %s155_s25, %s261_s1 }
  0x16   :  { %p161_p10 = pnand %p159_p9, %p156_p8 }
  0x18   :  { %164 = shalt.err (!%p161_p10)
}
  0x19   :  { %s165_s30 = scalar_lea.vmem %s37_s12, 64  ;;  %p170_p12 = scmp.lt.s32.totalorder %s37_s12, %s37_s12 }
  0x1a   :  { %p166_p11 = scmp.ne.s32.totalorder %s37_s12, %s165_s30  ;;  %p171_p13 = scmp.lt.s32.totalorder %s165_s30, %s165_s30 }
  0x1c   :  { %p172_p0 = por %p171_p13, %p170_p12 }
  0x1e   :  { %p173_p1 = pnand %p172_p0, %p166_p11 }
  0x20   :  { %176 = shalt.err (!%p173_p1)
}
  0x21   :  { %39 = dma.hbm_to_vmem [thread:$0]  %s261_s1, 64, %s37_s12, [#allocation7]  }
  0x22   :  { %199 = dma.done.wait [#allocation4], 64  }
  0x23   :  { %200 = vsyncadd [#allocation4], 4294967232 }
  0x24   :  { %201 = dma.done.wait [#allocation7], 64  }
  0x25   :  { %202 = vsyncadd [#allocation7], 4294967232  ;;  %v207_v0 = vmov 0.0   ;;  %v67_v1 = vlaneseq  ;;  %v62_v2 = vld [vmem:[#allocation6] sm:$0xf]  ;;  %vm75_vm1 = vcmask 1043456  }
  0x26   :  { %57 = vst [vmem:[#allocation2] sm:$0x1] %v207_v0  ;;  %v63_v3 = vmax.f32 %v62_v2, 1e-08  ;;  %v69_v6 = vld [vmem:[#allocation3] sm:$0xf] }
  0x27   :  { %v68_v4 = vand.u32 127, %v67_v1  ;;  %vm89_vm2 = vcmask 1040384   ;;  %s208_s5 = smov [#allocation8]  }
  0x28   :  { %v64_v5 = vmin.f32 %v63_v3, 1.0  ;;  %s111_s6 = sshll.u32 %s208_s5, 4  ;;  %s112_s6 = int_to_ptr.vmem [resolvable:$true] %s111_s6 }
  0x29   :  { %vm70_vm0 = vcmp.eq.s32.totalorder %v68_v4, %v69_v6  ;;  %s177_s8 = scalar_lea.vmem %s112_s6, 128  ;;  %p182_p3 = scmp.lt.s32.totalorder %s112_s6, %s112_s6 }
  0x2a   :  { %v65_v7 = vsub.f32 1.0, %v64_v5  ;;  %p178_p2 = scmp.ne.s32.totalorder %s112_s6, %s177_s8  ;;  %p183_p4 = scmp.lt.s32.totalorder %s177_s8, %s177_s8 }
  0x2c   :  { %v66_v8 = vmax.f32 %v65_v7, 1e-08  ;;  %p184_p5 = por %p183_p4, %p182_p3 }
  0x2d   :  { %v74_v18 = vld [vmem:[#allocation2] sm:$0x1] }
  0x2e   :  { %v71_v9 = vsel %vm70_vm0, %v64_v5, %v66_v8  ;;  %p185_p6 = pnand %p184_p5, %p178_p2 }
  0x2f   :  { %131 = vlog2.f32 %v71_v9 }
  0x39   :  { %v132_v10 = vpop.eup %131 }
  0x3a   :  { %v73_v11 = vmul.f32 0.6931472, %v132_v10 }
  0x3c   :  { %v76_v12 = vsel %vm75_vm1, %v73_v11, 0.0 }
  0x3d   :  { %v77_v13 = vrot.slane %v76_v12, 4 }
  0x3f   :  { %v78_v14 = vadd.f32 %v77_v13, %v76_v12 }
  0x41   :  { %v79_v15 = vrot.slane %v78_v14, 2 }
  0x43   :  { %v80_v16 = vadd.f32 %v79_v15, %v78_v14 }
  0x45   :  { %v81_v17 = vrot.slane %v80_v16, 1 }
  0x47   :  { %v82_v19 = vadd.f32 %v81_v17, %v80_v16 }
  0x49   :  { %v83_v20 = vadd.f32 %v82_v19, %v74_v18 }
  0x4b   :  { %84 = vst [vmem:[#allocation2] sm:$0x1] %v83_v20 }
  0x52   :  { %v88_v21 = vld [vmem:[#allocation2] sm:$0x1] }
  0x53   :  { %v90_v22 = vsel %vm89_vm2, %v88_v21, 0.0 }
  0x54   :  { %91 = vadd.xlane.f32.xlu0 %v90_v22 }
  0xe1   :  { %v92_v23 = vpop.xlane.xlu0 %91 }
  0xe2   :  { %v93_v24 = vrot.slane %v92_v23, 4 }
  0xe4   :  { %v94_v25 = vadd.f32 %v93_v24, %v92_v23 }
  0xe6   :  { %v95_v26 = vrot.slane %v94_v25, 2 }
  0xe8   :  { %v96_v27 = vadd.f32 %v95_v26, %v94_v25 }
  0xea   :  { %v97_v28 = vrot.slane %v96_v27, 1 }
  0xec   :  { %v98_v29 = vadd.f32 %v97_v28, %v96_v27 }
  0xee   :  { %125 = vpush %v98_v29 }
 0x11f   :  { %s126_s1 = spop %125 }
 0x120   :  { %s100_s4 = ssub.f32 0.0, %s126_s1 }
 0x122   :  { %s101_s7 = smul.f32 0.015625, %s100_s4 }
 0x124   :  { %v102_v30 = vstv %s101_s7 }
 0x125   :  { %104 = vst [vmem:[#allocation8] sm:$0xff] %v102_v30 }
 0x126   :  { %188 = shalt.err (!%p185_p6)
}
 0x127   :  { %s189_s11 = scalar_lea.hbm %s262_s2, 128 }
 0x128   :  { %p190_p7 = scmp.ne.s32.totalorder %s262_s2, %s189_s11  ;;  %p193_p8 = scmp.lt.u32.totalorder %s189_s11, %s262_s2 }
 0x12a   :  { %p195_p9 = pnand %p193_p8, %p190_p7 }
 0x12c   :  { %198 = shalt.err (!%p195_p9)
}
 0x12d   :  { %114 = dma.vmem_to_hbm [thread:$0]  %s112_s6, 128, %s262_s2, [#allocation5]  }
 0x12e   :  { %203 = dma.done.wait [#allocation5], 128  }
 0x12f   :  { %204 = vsyncadd [#allocation5], 4294967168 }
 0x130   :  { %118 = vsyncpa [#allocation4], 1 }
 0x131   :  { %119 = vsyncpa [#allocation7], 1 }
 0x132   :  { %120 = vsyncpa [#allocation5], 1 }

</bundles_post_ra>
